<compile_context>
chip_gen: v6e
topology: v6e:2x2x1
jax: 0.10.0
libtpu: 0.0.40
codegen_flags: <defaults>
</compile_context>

<pallas_src>
from functools import partial

import jax
import jax.numpy as jnp
from jax.experimental import pallas as pl
from jax.experimental.pallas import tpu as pltpu


def _round_up(x: int, m: int) -> int:
    return ((x + m - 1) // m) * m


def make_actor_kernel(max_action: float):
    """Fused 3-layer MLP. bf16 matmul operands, f32 accumulate/activations."""

    def actor_kernel(s_ref, w1_ref, b1_ref, w2_ref, b2_ref, w3_ref, b3_ref, o_ref):
        x = s_ref[...]  # bf16 (TB, S_pad)
        # Layer 1: (TB, S_pad) @ (S_pad, H) -> f32, ReLU in f32
        h1 = jnp.dot(x, w1_ref[...], preferred_element_type=jnp.float32) + b1_ref[...]
        h1 = jnp.maximum(h1, 0.0)
        # Layer 2: (TB, H) @ (H, H) -> f32, ReLU in f32
        h2 = jnp.dot(h1.astype(w2_ref.dtype), w2_ref[...],
                     preferred_element_type=jnp.float32) + b2_ref[...]
        h2 = jnp.maximum(h2, 0.0)
        # Layer 3: (TB, H) @ (H, A_pad) -> f32; max_action * tanh in f32,
        # cast to bf16 only at the store (halves the dominant HBM write).
        logits = jnp.dot(h2.astype(w3_ref.dtype), w3_ref[...],
                         preferred_element_type=jnp.float32) + b3_ref[...]
        o_ref[...] = (max_action * jnp.tanh(logits)).astype(o_ref.dtype)

    return actor_kernel


@partial(jax.jit, static_argnames=("max_action", "action_dim", "block_b"))
def actor_forward(state, params, max_action: float, action_dim: int, block_b: int = 1024):
    """Run the fused Actor forward pass.

    state:  (batch, state_dim) float32
    params: dict from init_actor_params (bf16 weights padded to lane multiples,
            f32 biases).
    Returns (batch, action_dim) float32 actions.
    """
    batch, state_dim = state.shape
    s_pad, hidden = params["w1"].shape
    a_pad = params["w3"].shape[1]

    # Batch tile: multiple of 16 (bf16 sublane packing), capped at block_b,
    # and sized so large batches split into >= 2 grid steps (v7x megacore).
    half = _round_up(max((batch + 1) // 2, 1), 16)
    tb = max(16, min(block_b, half))
    batch_p = _round_up(batch, 16)          # tiny (<16-row) pad only
    grid = (pl.cdiv(batch_p, tb),)          # ragged tail -> partial last block

    x = state.astype(jnp.bfloat16)
    if batch_p != batch or s_pad != state_dim:
        x = jnp.pad(x, ((0, batch_p - batch), (0, s_pad - state_dim)))

    out = pl.pallas_call(
        make_actor_kernel(max_action),
        out_shape=jax.ShapeDtypeStruct((batch_p, a_pad), jnp.bfloat16),
        grid=grid,
        in_specs=[
            pl.BlockSpec((tb, s_pad), lambda i: (i, 0)),       # state: tiled over batch
            pl.BlockSpec((s_pad, hidden), lambda i: (0, 0)),   # weights/biases stay
            pl.BlockSpec((1, hidden), lambda i: (0, 0)),       # VMEM-resident across
            pl.BlockSpec((hidden, hidden), lambda i: (0, 0)),  # the batch grid loop
            pl.BlockSpec((1, hidden), lambda i: (0, 0)),
            pl.BlockSpec((hidden, a_pad), lambda i: (0, 0)),
            pl.BlockSpec((1, a_pad), lambda i: (0, 0)),
        ],
        out_specs=pl.BlockSpec((tb, a_pad), lambda i: (i, 0)),
        compiler_params=pltpu.CompilerParams(
            dimension_semantics=("parallel",)),                # megacore split on v7x
    )(x, params["w1"], params["b1"], params["w2"], params["b2"],
      params["w3"], params["b3"])

    # Slice + upcast happen inside the same jit as the kernel (single dispatch).
    return out[:batch, :action_dim].astype(jnp.float32)


def xavier_uniform(key, fan_in, fan_out, dtype=jnp.float32):
    # gain = 1, matches torch.nn.init.xavier_uniform_
    limit = jnp.sqrt(6.0 / (fan_in + fan_out))
    return jax.random.uniform(key, (fan_in, fan_out), dtype, -limit, limit)


def init_actor_params(key, state_dim, hidden_dim, action_dim, *, lane=128):
    """Weights stored (in, out); layer-1 K and layer-3 N zero-padded to lane
    multiples once at init; weights bf16 for the MXU, biases f32."""
    k1, k2, k3 = jax.random.split(key, 3)
    s_pad = _round_up(state_dim, lane)
    a_pad = _round_up(action_dim, lane)

    w1 = xavier_uniform(k1, state_dim, hidden_dim)
    w1 = jnp.pad(w1, ((0, s_pad - state_dim), (0, 0)))
    w2 = xavier_uniform(k2, hidden_dim, hidden_dim)
    w3 = xavier_uniform(k3, hidden_dim, action_dim)
    w3 = jnp.pad(w3, ((0, 0), (0, a_pad - action_dim)))

    return {
        "w1": w1.astype(jnp.bfloat16),
        "b1": jnp.zeros((1, hidden_dim), jnp.float32),
        "w2": w2.astype(jnp.bfloat16),
        "b2": jnp.zeros((1, hidden_dim), jnp.float32),
        "w3": w3.astype(jnp.bfloat16),
        "b3": jnp.zeros((1, a_pad), jnp.float32),
    }


def actor_reference_bf16(state, params, max_action, action_dim):
    """Pure-JAX reference with the same bf16-matmul / f32 math / bf16 store."""
    s_pad = params["w1"].shape[0]
    x = jnp.pad(state.astype(jnp.bfloat16), ((0, 0), (0, s_pad - state.shape[1])))
    h1 = jnp.maximum(
        jnp.dot(x, params["w1"], preferred_element_type=jnp.float32) + params["b1"], 0.0)
    h2 = jnp.maximum(
        jnp.dot(h1.astype(jnp.bfloat16), params["w2"],
                preferred_element_type=jnp.float32) + params["b2"], 0.0)
    logits = jnp.dot(h2.astype(jnp.bfloat16), params["w3"],
                     preferred_element_type=jnp.float32) + params["b3"]
    act = (max_action * jnp.tanh(logits)).astype(jnp.bfloat16)
    return act[:, :action_dim].astype(jnp.float32)


if __name__ == "__main__":
    key = jax.random.PRNGKey(0)
    k_state, k_params = jax.random.split(key)

    batch = 20            # deliberately not a multiple of the batch tile
    state_dim = 16
    hidden_dim = 256
    action_dim = 8
    max_action = 2.0

    state = jax.random.normal(k_state, (batch, state_dim), jnp.float32)
    params = init_actor_params(k_params, state_dim, hidden_dim, action_dim)

    # With batch=20 the tile logic picks tb=16 -> a 2-step pipelined grid.
    out = actor_forward(state, params, max_action=max_action, action_dim=action_dim)
    out = jax.block_until_ready(out)
    assert out.shape == (batch, action_dim)
    assert out.dtype == jnp.float32

    # Check 1: matches a pure-JAX reference of the same bf16/f32 math
    # (tolerance covers one bf16 ulp from MXU-vs-XLA reduction order).
    ref_bf16 = actor_reference_bf16(state, params, max_action, action_dim)
    assert jnp.allclose(out, ref_bf16, atol=2e-2, rtol=2e-2), (
        float(jnp.max(jnp.abs(out - ref_bf16))))

    # Check 2: close to the original full-f32 module semantics (bf16 rounding
    # of operands and of the stored output is the only difference).
    w1f = params["w1"][:state_dim].astype(jnp.float32)
    w2f = params["w2"].astype(jnp.float32)
    w3f = params["w3"][:, :action_dim].astype(jnp.float32)
    h1 = jnp.maximum(state @ w1f + params["b1"], 0.0)
    h2 = jnp.maximum(h1 @ w2f + params["b2"], 0.0)
    ref_f32 = max_action * jnp.tanh(h2 @ w3f + params["b3"][:, :action_dim])
    assert jnp.allclose(out, ref_f32, atol=1e-1, rtol=1e-1), (
        float(jnp.max(jnp.abs(out - ref_f32))))

    print("KERNEL_OK")
</pallas_src>

<mosaic_0001>
module attributes {stable_mosaic.version = 11 : i64} {
  func.func @actor_kernel(%arg0: i32, %arg1: memref<16x128xbf16, #tpu.memory_space<vmem>>, %arg2: memref<128x256xbf16, #tpu.memory_space<vmem>>, %arg3: memref<1x256xf32, #tpu.memory_space<vmem>>, %arg4: memref<256x256xbf16, #tpu.memory_space<vmem>>, %arg5: memref<1x256xf32, #tpu.memory_space<vmem>>, %arg6: memref<256x128xbf16, #tpu.memory_space<vmem>>, %arg7: memref<1x128xf32, #tpu.memory_space<vmem>>, %arg8: memref<16x128xbf16, #tpu.memory_space<vmem>>) attributes {dimension_semantics = [#tpu.dimension_semantics<parallel>], iteration_bounds = array<i64: 2>, scalar_prefetch = 0 : i64, scratch_operands = 0 : i64, tpu.core_type = #tpu.core_type<tc>, window_params = [{transform_indices = @transform_0, window_bounds = array<i64: 16, 128>}, {pipeline_mode = #tpu.pipeline_mode<synchronous>, transform_indices = @transform_1, window_bounds = array<i64: 128, 256>}, {pipeline_mode = #tpu.pipeline_mode<synchronous>, transform_indices = @transform_2, window_bounds = array<i64: 1, 256>}, {pipeline_mode = #tpu.pipeline_mode<synchronous>, transform_indices = @transform_3, window_bounds = array<i64: 256, 256>}, {pipeline_mode = #tpu.pipeline_mode<synchronous>, transform_indices = @transform_4, window_bounds = array<i64: 1, 256>}, {pipeline_mode = #tpu.pipeline_mode<synchronous>, transform_indices = @transform_5, window_bounds = array<i64: 256, 128>}, {pipeline_mode = #tpu.pipeline_mode<synchronous>, transform_indices = @transform_6, window_bounds = array<i64: 1, 128>}, {transform_indices = @transform_7, window_bounds = array<i64: 16, 128>}]} {
    %c0 = arith.constant 0 : index
    %c0_0 = arith.constant 0 : index
    %0 = vector.load %arg1[%c0, %c0_0] : memref<16x128xbf16, #tpu.memory_space<vmem>>, vector<16x128xbf16>
    %c0_1 = arith.constant 0 : index
    %c0_2 = arith.constant 0 : index
    %1 = vector.load %arg2[%c0_1, %c0_2] : memref<128x256xbf16, #tpu.memory_space<vmem>>, vector<128x256xbf16>
    %cst = arith.constant dense<0.000000e+00> : vector<16x256xf32>
    %2 = tpu.matmul %0, %1, %cst {dimension_numbers = #tpu.dot_dimension_numbers<[1], [0], [0], [1], [0, 0, 1, 1], [], []>} : vector<16x128xbf16>, vector<128x256xbf16>, vector<16x256xf32> -> vector<16x256xf32>
    %c0_3 = arith.constant 0 : index
    %c0_4 = arith.constant 0 : index
    %3 = vector.load %arg3[%c0_3, %c0_4] : memref<1x256xf32, #tpu.memory_space<vmem>>, vector<1x256xf32>
    %4 = vector.broadcast %3 : vector<1x256xf32> to vector<16x256xf32>
    %5 = arith.addf %2, %4 : vector<16x256xf32>
    %cst_5 = arith.constant 0.000000e+00 : f32
    %6 = vector.broadcast %cst_5 : f32 to vector<16x256xf32>
    %7 = arith.maximumf %5, %6 : vector<16x256xf32>
    %8 = arith.truncf %7 : vector<16x256xf32> to vector<16x256xbf16>
    %c0_6 = arith.constant 0 : index
    %c0_7 = arith.constant 0 : index
    %9 = vector.load %arg4[%c0_6, %c0_7] : memref<256x256xbf16, #tpu.memory_space<vmem>>, vector<256x256xbf16>
    %cst_8 = arith.constant dense<0.000000e+00> : vector<16x256xf32>
    %10 = tpu.matmul %8, %9, %cst_8 {dimension_numbers = #tpu.dot_dimension_numbers<[1], [0], [0], [1], [0, 0, 1, 1], [], []>} : vector<16x256xbf16>, vector<256x256xbf16>, vector<16x256xf32> -> vector<16x256xf32>
    %c0_9 = arith.constant 0 : index
    %c0_10 = arith.constant 0 : index
    %11 = vector.load %arg5[%c0_9, %c0_10] : memref<1x256xf32, #tpu.memory_space<vmem>>, vector<1x256xf32>
    %12 = vector.broadcast %11 : vector<1x256xf32> to vector<16x256xf32>
    %13 = arith.addf %10, %12 : vector<16x256xf32>
    %cst_11 = arith.constant 0.000000e+00 : f32
    %14 = vector.broadcast %cst_11 : f32 to vector<16x256xf32>
    %15 = arith.maximumf %13, %14 : vector<16x256xf32>
    %16 = arith.truncf %15 : vector<16x256xf32> to vector<16x256xbf16>
    %c0_12 = arith.constant 0 : index
    %c0_13 = arith.constant 0 : index
    %17 = vector.load %arg6[%c0_12, %c0_13] : memref<256x128xbf16, #tpu.memory_space<vmem>>, vector<256x128xbf16>
    %cst_14 = arith.constant dense<0.000000e+00> : vector<16x128xf32>
    %18 = tpu.matmul %16, %17, %cst_14 {dimension_numbers = #tpu.dot_dimension_numbers<[1], [0], [0], [1], [0, 0, 1, 1], [], []>} : vector<16x256xbf16>, vector<256x128xbf16>, vector<16x128xf32> -> vector<16x128xf32>
    %c0_15 = arith.constant 0 : index
    %c0_16 = arith.constant 0 : index
    %19 = vector.load %arg7[%c0_15, %c0_16] : memref<1x128xf32, #tpu.memory_space<vmem>>, vector<1x128xf32>
    %20 = vector.broadcast %19 : vector<1x128xf32> to vector<16x128xf32>
    %21 = arith.addf %18, %20 : vector<16x128xf32>
    %22 = math.tanh %21 : vector<16x128xf32>
    %cst_17 = arith.constant 2.000000e+00 : f32
    %23 = vector.broadcast %cst_17 : f32 to vector<16x128xf32>
    %24 = arith.mulf %23, %22 : vector<16x128xf32>
    %25 = arith.truncf %24 : vector<16x128xf32> to vector<16x128xbf16>
    %c0_18 = arith.constant 0 : index
    %c0_19 = arith.constant 0 : index
    %26 = vector.load %arg8[%c0_18, %c0_19] : memref<16x128xbf16, #tpu.memory_space<vmem>>, vector<16x128xbf16>
    tpu.vector_store %arg8[%c0_18, %c0_19], %25 {strides = array<i32>} : memref<16x128xbf16, #tpu.memory_space<vmem>>, vector<16x128xbf16>,
    return
  }
  func.func @transform_0(%arg0: i32) -> (i32, i32) {
    %c0_i32 = arith.constant 0 : i32
    %c0_i32_0 = arith.constant 0 : i32
    return %arg0, %c0_i32 : i32, i32
  }
  func.func @transform_1(%arg0: i32) -> (i32, i32) {
    %c0_i32 = arith.constant 0 : i32
    %c0_i32_0 = arith.constant 0 : i32
    %c0_i32_1 = arith.constant 0 : i32
    return %c0_i32, %c0_i32_0 : i32, i32
  }
  func.func @transform_2(%arg0: i32) -> (i32, i32) {
    %c0_i32 = arith.constant 0 : i32
    %c0_i32_0 = arith.constant 0 : i32
    %c0_i32_1 = arith.constant 0 : i32
    return %c0_i32, %c0_i32_0 : i32, i32
  }
  func.func @transform_3(%arg0: i32) -> (i32, i32) {
    %c0_i32 = arith.constant 0 : i32
    %c0_i32_0 = arith.constant 0 : i32
    %c0_i32_1 = arith.constant 0 : i32
    return %c0_i32, %c0_i32_0 : i32, i32
  }
  func.func @transform_4(%arg0: i32) -> (i32, i32) {
    %c0_i32 = arith.constant 0 : i32
    %c0_i32_0 = arith.constant 0 : i32
    %c0_i32_1 = arith.constant 0 : i32
    return %c0_i32, %c0_i32_0 : i32, i32
  }
  func.func @transform_5(%arg0: i32) -> (i32, i32) {
    %c0_i32 = arith.constant 0 : i32
    %c0_i32_0 = arith.constant 0 : i32
    %c0_i32_1 = arith.constant 0 : i32
    return %c0_i32, %c0_i32_0 : i32, i32
  }
  func.func @transform_6(%arg0: i32) -> (i32, i32) {
    %c0_i32 = arith.constant 0 : i32
    %c0_i32_0 = arith.constant 0 : i32
    %c0_i32_1 = arith.constant 0 : i32
    return %c0_i32, %c0_i32_0 : i32, i32
  }
  func.func @transform_7(%arg0: i32) -> (i32, i32) {
    %c0_i32 = arith.constant 0 : i32
    %c0_i32_0 = arith.constant 0 : i32
    return %arg0, %c0_i32 : i32, i32
  }
}

</mosaic_0001>

<bundles_post_ra>
// kernel: actor_forward.1
= control target key start
LH: loop header
LB: loop body
LE: loop exit
PB: predicated region body
PF: predicated region fallthrough
CT: control target
= control target key end

     0   :  { %12 = vsyncpa [#allocation3], 0  ;;  %s1521_s0 = inlined_call_operand.vmem [shape: bf16[32,128], index: 0, kind: input, shape index: {}]   ;;  %s1522_s1 = inlined_call_operand.hbm [shape: bf16[128,256], index: 1, kind: input, shape index: {}]   ;;  %s1523_s2 = inlined_call_operand.vmem [shape: f32[1,256], index: 2, kind: input, shape index: {}]   ;;  %s1524_s3 = inlined_call_operand.hbm [shape: bf16[256,256], index: 3, kind: input, shape index: {}]   ;;  %s1525_s4 = inlined_call_operand.vmem [shape: f32[1,256], index: 4, kind: input, shape index: {}]   ;;  %s1526_s5 = inlined_call_operand.hbm [shape: bf16[256,128], index: 5, kind: input, shape index: {}]   ;;  %s1527_s6 = inlined_call_operand.vmem [shape: f32[1,128], index: 6, kind: input, shape index: {}]   ;;  %s1528_s7 = inlined_call_operand.vmem [shape: bf16[32,128], index: 7, kind: output, shape index: {}]  }
   0x1   :  { %13 = vsyncpa [#allocation5], 0  ;;  %s1415_s24 = smov 0  }
   0x2 LB: > { %s1022_s25 = sadd.s32 4294967295, %s1365_s24   ;;  %p1024_p0 = scmp.ge.s32.totalorder %s1365_s24, 1  ;;  %s1365_s24 = sphi %s1415_s24, %s19_s24  }
   0x3   : > { %p202_p1 = scmp.lt.s32.totalorder %s1365_s24, 3  ;;  %p1425_p2 = scmp.eq.s32.totalorder %s1022_s25, 0 }
   0x4   : > { %s1367_s28 = smov [#allocation4]   ;;  %s1368_s30 = smov [#allocation2]  }
   0x5   : > { %p1429_p3 = pnand %p1024_p0, %p202_p1  ;;  %s230_s29 = sshll.u32 %s1367_s28, 4  ;;  %s231_s29 = int_to_ptr.vmem [resolvable:$true] %s230_s29 }
   0x6   : > { %s214_s8 = sshll.u32 %s1368_s30, 4  ;;  %s1369_s10 = smov [#allocation6]   ;;  %s1435_s8 = int_to_ptr.vmem [resolvable:$true] %s214_s8 }
   0x7   : > { %p1148_p4 = pneg %p1429_p3  ;;  %s246_s11 = sshll.u32 %s1369_s10, 4  ;;  %s1443_s11 = int_to_ptr.vmem [resolvable:$true] %s246_s11 }
   0x8   : > { %s1284_s12 = scalar_lea.vmem %s231_s29, 4096  ;;  %p1292_p10 = scmp.lt.s32.totalorder %s231_s29, %s231_s29 }
   0x9   : > { %p1439_p5 = pnand %p1425_p2, %p1148_p4  ;;  %p1285_p7 = scmp.ne.s32.totalorder %s231_s29, %s1284_s12 }
   0xa   : > { %p1293_p11 = scmp.lt.s32.totalorder %s1284_s12, %s1284_s12 }
   0xb   : > { %p1275_p6 = pneg %p1439_p5 }
   0xc   : > { %p1294_p12 = por %p1293_p11, %p1292_p10 }
   0xd   : > { %p1287_p8 = pnand %p1285_p7, %p1275_p6 }
   0xf   : > { %p1288_p9 = pneg %p1287_p8 }
  0x11   : > { %p1295_p13 = pnand %p1294_p12, %p1288_p9 }
  0x13   : > { %1298 = shalt.err (!%p1295_p13)
}
  0x14   : > { %s1370_s13 = smov 128   ;;  %s1371_s14 = smov 8  }
  0x15   : > { %1154 = dma.hbm_to_vmem [thread:$0]  (!%p1439_p5), %s1524_s3, 4096, %s231_s29, [#allocation5], %s1370_s13, %s1370_s13, %s1371_s14  }
  0x16   : > { %s1310_s17 = scalar_lea.vmem %s1435_s8, 2048  ;;  %p1318_p7 = scmp.lt.s32.totalorder %s1435_s8, %s1435_s8 }
  0x17   : > { %p1311_p0 = scmp.ne.s32.totalorder %s1435_s8, %s1310_s17  ;;  %p1319_p8 = scmp.lt.s32.totalorder %s1310_s17, %s1310_s17 }
  0x19   : > { %p1313_p1 = pnand %p1311_p0, %p1275_p6  ;;  %p1320_p9 = por %p1319_p8, %p1318_p7 }
  0x1b   : > { %p1314_p4 = pneg %p1313_p1 }
  0x1d   : > { %p1321_p10 = pnand %p1320_p9, %p1314_p4 }
  0x1f   : > { %1324 = shalt.err (!%p1321_p10)
}
  0x20   : > { %1151 = dma.hbm_to_vmem [thread:$0]  (!%p1439_p5), %s1522_s1, 2048, %s1435_s8, [#allocation3], %s1370_s13, %s1370_s13, %s1371_s14  }
  0x21   : > { %s1336_s20 = scalar_lea.vmem %s1443_s11, 2048  ;;  %p1344_p0 = scmp.lt.s32.totalorder %s1443_s11, %s1443_s11 }
  0x22   : > { %p1337_p11 = scmp.ne.s32.totalorder %s1443_s11, %s1336_s20  ;;  %p1345_p1 = scmp.lt.s32.totalorder %s1336_s20, %s1336_s20 }
  0x24   : > { %p1339_p12 = pnand %p1337_p11, %p1275_p6  ;;  %p1346_p4 = por %p1345_p1, %p1344_p0 }
  0x26   : > { %p1340_p13 = pneg %p1339_p12 }
  0x28   : > { %p1347_p7 = pnand %p1346_p4, %p1340_p13 }
  0x2a   : > { %1350 = shalt.err (!%p1347_p7)
}
  0x2b   : > { %s1372_s21 = smov 64   ;;  %s1373_s22 = smov 4  }
  0x2c   : > { %1157 = dma.hbm_to_vmem [thread:$0]  (!%p1439_p5), %s1526_s5, 2048, %s1443_s11, [#allocation5], %s1372_s21, %s1372_s21, %s1373_s22  }
  0x2d   : > { %274 = sbr.rel (%p1429_p3) target bundleno = 720 (0x2d0), region = 48 }
  0x32   : > { %1356 = dma.done.wait (%p1425_p2), [#allocation3], 2048  }
  0x33   : > { %1358 = vsyncadd (%p1425_p2), [#allocation3], 4294965248 }
  0x34   : > { %1360 = dma.done.wait (%p1425_p2), [#allocation5], 6144  }
  0x35   : > { %1362 = vsyncadd (%p1425_p2), [#allocation5], 4294961152  ;;  %v1374_v0 = vmov 0   ;;  %s1033_s29 = sshll.u32 %s1022_s25, 1  ;;  %v1180_v1 = vld [vmem:[#allocation2 + $0x74] ss:$8 sps:$4 sm:$0xff]   ;;  %v347_v60 = vlaneseq }
  0x36   : > { %475 = vmatprep.mubr.bf16.mxu0 %v1374_v0  ;;  %p315_p5 = scmp.lt.s32.totalorder %s1033_s29, 3  ;;  %v1182_v2 = vld [vmem:[#allocation2 + $0x70] ss:$8 sps:$4 sm:$0xff]   ;;  %443 = vmatprep.subr.bf16.mxu0 %v1180_v1  ;;  %v1183_v3 = vld [vmem:[#allocation2 + $0x64] ss:$8 sps:$4 sm:$0xff]  }
  0x37   : > { %444 = vmatpush1.bf16.msra.mxu0 %v1182_v2  ;;  %v1185_v4 = vld [vmem:[#allocation2 + $0x60] ss:$8 sps:$4 sm:$0xff]   ;;  %v1186_v5 = vld [vmem:[#allocation2 + $0x54] ss:$8 sps:$4 sm:$0xff]   ;;  %v1188_v6 = vld [vmem:[#allocation2 + $0x50] ss:$8 sps:$4 sm:$0xff]  }
  0x38   : > { %s1533_s29 = smov (!%p315_p5, %s1033_s29), 3  ;;  %445 = vmatprep.subr.bf16.mxu0 %v1183_v3  ;;  %v1189_v7 = vld [vmem:[#allocation2 + $0x44] ss:$8 sps:$4 sm:$0xff]   ;;  %v1191_v8 = vld [vmem:[#allocation2 + $0x40] ss:$8 sps:$4 sm:$0xff]   ;;  %v1253_v50 = vld [vmem:[#allocation6 + $0x78] sm:$0xff]  }
  0x39   : > { %s1034_s26 = sshll.u32 %s1533_s29, 2  ;;  %v1192_v9 = vld [vmem:[#allocation2 + $0x34] ss:$8 sps:$4 sm:$0xff]   ;;  %v1207_v11 = vld [vmem:[#allocation4 + $0x70] ss:$8 sps:$4 sm:$0xff]   ;;  %v1257_v54 = vld [vmem:[#allocation6 + $0x68] sm:$0xff]  }
  0x3a   : > { %s1501_s30 = scalar_lea.vmem %s1521_s0, %s1034_s26  ;;  %v1205_v10 = vld [vmem:[#allocation4 + $0x74] ss:$8 sps:$4 sm:$0xff]   ;;  %v1208_v12 = vld [vmem:[#allocation4 + $0x64] ss:$8 sps:$4 sm:$0xff]   ;;  %v1194_v13 = vld [vmem:[#allocation2 + $0x30] ss:$8 sps:$4 sm:$0xff]   ;;  %s324_s16 = scalar_lea.vmem %s1528_s7, %s1034_s26 }
  0x3b   : > { %446 = vmatpush1.bf16.msra.mxu0 %v1185_v4  ;;  %696 = vmatprep.subr.bf16.mxu1 %v1205_v10  ;;  %v1210_v14 = vld [vmem:[#allocation4 + $0x60] ss:$8 sps:$4 sm:$0xff]   ;;  %v1195_v15 = vld [vmem:[#allocation2 + $0x24] ss:$8 sps:$4 sm:$0xff]   ;;  %v1211_v16 = vld [vmem:[#allocation4 + $0x54] ss:$8 sps:$4 sm:$0xff]  }
  0x3c   : > { %447 = vmatprep.subr.bf16.mxu0 %v1186_v5  ;;  %697 = vmatpush1.bf16.msra.mxu1 %v1207_v11  ;;  %v1197_v17 = vld [vmem:[#allocation2 + $0x20] ss:$8 sps:$4 sm:$0xff]   ;;  %v1213_v18 = vld [vmem:[#allocation4 + $0x50] ss:$8 sps:$4 sm:$0xff]   ;;  %v1198_v19 = vld [vmem:[#allocation2 + $0x14] ss:$8 sps:$4 sm:$0xff]  }
  0x3d   : > { %698 = vmatprep.subr.bf16.mxu1 %v1208_v12  ;;  %v1214_v20 = vld [vmem:[#allocation4 + $0x44] ss:$8 sps:$4 sm:$0xff]   ;;  %v1200_v21 = vld [vmem:[#allocation2 + $0x10] ss:$8 sps:$4 sm:$0xff]   ;;  %v1216_v22 = vld [vmem:[#allocation4 + $0x40] ss:$8 sps:$4 sm:$0xff]  }
  0x3e   : > { %v1201_v23 = vld [vmem:[#allocation2 + $0x4] ss:$8 sps:$4 sm:$0xff]   ;;  %v1217_v24 = vld [vmem:[#allocation4 + $0x34] ss:$8 sps:$4 sm:$0xff]   ;;  %v1203_v25 = vld [vmem:[#allocation2] ss:$8 sps:$4 sm:$0xff]  }
  0x3f   : > { %448 = vmatpush1.bf16.msra.mxu0 %v1188_v6  ;;  %v1219_v26 = vld [vmem:[#allocation4 + $0x30] ss:$8 sps:$4 sm:$0xff]   ;;  %v1204_v27 = vld [vmem:[%s1501_s30] sm:$0xff]   ;;  %v1223_v30 = vld [vmem:[#allocation4 + $0x14] ss:$8 sps:$4 sm:$0xff]   ;;  %v348_v61 = vshrl.u32 %v347_v60, 7 }
  0x40   : > { %449 = vmatprep.subr.bf16.mxu0 %v1189_v7  ;;  %699 = vmatpush1.bf16.msra.mxu1 %v1210_v14  ;;  %v1220_v28 = vld [vmem:[#allocation4 + $0x24] ss:$8 sps:$4 sm:$0xff]   ;;  %v1222_v29 = vld [vmem:[#allocation4 + $0x20] ss:$8 sps:$4 sm:$0xff]   ;;  %v1225_v31 = vld [vmem:[#allocation4 + $0x10] ss:$8 sps:$4 sm:$0xff]  }
  0x41   : > { %700 = vmatprep.subr.bf16.mxu1 %v1211_v16  ;;  %v1226_v32 = vld [vmem:[#allocation4 + $0x4] ss:$8 sps:$4 sm:$0xff]   ;;  %v1228_v33 = vld [vmem:[#allocation4] ss:$8 sps:$4 sm:$0xff]   ;;  %v1229_v34 = vld [vmem:[#allocation4 + $0xf4] ss:$8 sps:$4 sm:$0xff]  }
  0x42   : > { %v1231_v35 = vld [vmem:[#allocation4 + $0xf0] ss:$8 sps:$4 sm:$0xff]   ;;  %v1232_v36 = vld [vmem:[#allocation4 + $0xe4] ss:$8 sps:$4 sm:$0xff]   ;;  %v1234_v37 = vld [vmem:[#allocation4 + $0xe0] ss:$8 sps:$4 sm:$0xff]  }
  0x43   : > { %450 = vmatpush1.bf16.msra.mxu0 %v1191_v8  ;;  %v1235_v38 = vld [vmem:[#allocation4 + $0xd4] ss:$8 sps:$4 sm:$0xff]   ;;  %v1237_v39 = vld [vmem:[#allocation4 + $0xd0] ss:$8 sps:$4 sm:$0xff]   ;;  %v1238_v40 = vld [vmem:[#allocation4 + $0xc4] ss:$8 sps:$4 sm:$0xff]  }
  0x44   : > { %451 = vmatprep.subr.bf16.mxu0 %v1192_v9  ;;  %701 = vmatpush1.bf16.msra.mxu1 %v1213_v18  ;;  %v1240_v41 = vld [vmem:[#allocation4 + $0xc0] ss:$8 sps:$4 sm:$0xff]   ;;  %v1241_v42 = vld [vmem:[#allocation4 + $0xb4] ss:$8 sps:$4 sm:$0xff]   ;;  %v1243_v43 = vld [vmem:[#allocation4 + $0xb0] ss:$8 sps:$4 sm:$0xff]  }
  0x45   : > { %702 = vmatprep.subr.bf16.mxu1 %v1214_v20  ;;  %v1244_v44 = vld [vmem:[#allocation4 + $0xa4] ss:$8 sps:$4 sm:$0xff]   ;;  %v1246_v45 = vld [vmem:[#allocation4 + $0xa0] ss:$8 sps:$4 sm:$0xff]   ;;  %v1247_v46 = vld [vmem:[#allocation4 + $0x94] ss:$8 sps:$4 sm:$0xff]  }
  0x46   : > { %v1249_v47 = vld [vmem:[#allocation4 + $0x90] ss:$8 sps:$4 sm:$0xff]   ;;  %v1250_v48 = vld [vmem:[#allocation4 + $0x84] ss:$8 sps:$4 sm:$0xff]   ;;  %v1252_v49 = vld [vmem:[#allocation4 + $0x80] ss:$8 sps:$4 sm:$0xff]  }
  0x47   : > { %452 = vmatpush1.bf16.msra.mxu0 %v1194_v13  ;;  %v1254_v51 = vld [vmem:[#allocation6 + $0x38] sm:$0xff]   ;;  %v1255_v52 = vld [vmem:[#allocation6 + $0x70] sm:$0xff]   ;;  %v1258_v55 = vld [vmem:[#allocation6 + $0x28] sm:$0xff]   ;;  %v353_v62 = vsub.s32 1, %v348_v61  ;;  %v349_v63 = vsub.s32 0, %v348_v61 }
  0x48   : > { %453 = vmatprep.subr.bf16.mxu0 %v1195_v15  ;;  %703 = vmatpush1.bf16.msra.mxu1 %v1216_v22  ;;  %v1256_v53 = vld [vmem:[#allocation6 + $0x30] sm:$0xff]   ;;  %v1259_v56 = vld [vmem:[#allocation6 + $0x60] sm:$0xff]   ;;  %v1261_v58 = vld [vmem:[#allocation6 + $0x58] sm:$0xff]  }
  0x49   : > { %704 = vmatprep.subr.bf16.mxu1 %v1217_v24  ;;  %v1260_v57 = vld [vmem:[#allocation6 + $0x20] sm:$0xff]   ;;  %v1262_v59 = vld [vmem:[#allocation6 + $0x18] sm:$0xff]   ;;  %v1264_v18 = vld [vmem:[#allocation6 + $0x10] sm:$0xff]  }
  0x4a   : > { %v345_v0 = vld [vmem:[%s1523_s2] sm:$0x3]  ;;  %v1266_v20 = vld [vmem:[#allocation6 + $0x8] sm:$0xff]  }
  0x4b   : > { %454 = vmatpush1.bf16.msra.mxu0 %v1197_v17  ;;  %v354_v2 = vrot.slane %v345_v0, %v353_v62  ;;  %v350_v3 = vrot.slane %v345_v0, %v349_v63  ;;  %v1263_v17 = vld [vmem:[#allocation6 + $0x50] sm:$0xff]   ;;  %v1268_v22 = vld [vmem:[#allocation6] sm:$0xff]  }
  0x4c   : > { %455 = vmatprep.subr.bf16.mxu0 %v1198_v19  ;;  %705 = vmatpush1.bf16.msra.mxu1 %v1219_v26  ;;  %v1265_v19 = vld [vmem:[#allocation6 + $0x48] sm:$0xff]  }
  0x4d   : > { %706 = vmatprep.subr.bf16.mxu1 %v1220_v28 }
  0x4f   : > { %456 = vmatpush1.bf16.msra.mxu0 %v1200_v21  ;;  %v1267_v21 = vld [vmem:[#allocation6 + $0x40] sm:$0xff]  }
  0x50   : > { %457 = vmatprep.subr.bf16.mxu0 %v1201_v23  ;;  %707 = vmatpush1.bf16.msra.mxu1 %v1222_v29  ;;  %v524_v23 = vld [vmem:[%s1525_s4] sm:$0x3] }
  0x51   : > { %708 = vmatprep.subr.bf16.mxu1 %v1223_v30  ;;  %v529_v26 = vrot.slane %v524_v23, %v349_v63 }
  0x53   : > { %458 = vmatpush1.bf16.msra.mxu0 %v1203_v25  ;;  %v533_v25 = vrot.slane %v524_v23, %v353_v62 }
  0x54   : > { %709 = vmatpush1.bf16.msra.mxu1 %v1225_v31  ;;  %1114 = vmatprep.subr.bf16.mxu0 %v1253_v50 }
  0x55   : > { %710 = vmatprep.subr.bf16.mxu1 %v1226_v32 }
  0x56   : > { %476 = vmatmul.mubr.bf16.vlgmr.msra.gmra.mxu0 %v1204_v27 }
  0x57   : > { %1115 = vmatpush3.bf16.msra.mxu0 %v1254_v51 }
  0x58   : > { %711 = vmatpush1.bf16.msra.mxu1 %v1228_v33  ;;  %1116 = vmatprep.subr.bf16.mxu0 %v1255_v52 }
  0x59   : > { %712 = vmatprep.subr.bf16.mxu1 %v1229_v34 }
  0x5b   : > { %1117 = vmatpush3.bf16.msra.mxu0 %v1256_v53 }
  0x5c   : > { %713 = vmatpush2.bf16.msra.mxu1 %v1231_v35  ;;  %1118 = vmatprep.subr.bf16.mxu0 %v1257_v54 }
  0x5d   : > { %714 = vmatprep.subr.bf16.mxu1 %v1232_v36 }
  0x5f   : > { %1119 = vmatpush3.bf16.msra.mxu0 %v1258_v55 }
  0x60   : > { %715 = vmatpush2.bf16.msra.mxu1 %v1234_v37  ;;  %1120 = vmatprep.subr.bf16.mxu0 %v1259_v56 }
  0x61   : > { %716 = vmatprep.subr.bf16.mxu1 %v1235_v38 }
  0x63   : > { %1121 = vmatpush3.bf16.msra.mxu0 %v1260_v57 }
  0x64   : > { %717 = vmatpush2.bf16.msra.mxu1 %v1237_v39  ;;  %1122 = vmatprep.subr.bf16.mxu0 %v1261_v58 }
  0x65   : > { %718 = vmatprep.subr.bf16.mxu1 %v1238_v40 }
  0x67   : > { %1123 = vmatpush3.bf16.msra.mxu0 %v1262_v59 }
  0x68   : > { %719 = vmatpush2.bf16.msra.mxu1 %v1240_v41  ;;  %1124 = vmatprep.subr.bf16.mxu0 %v1263_v17  ;;  %v1086_v41 = vld [vmem:[%s1527_s6] ss:$0 sm:$0xff] }
  0x69   : > { %720 = vmatprep.subr.bf16.mxu1 %v1241_v42 }
  0x6b   : > { %1125 = vmatpush3.bf16.msra.mxu0 %v1264_v18 }
  0x6c   : > { %721 = vmatpush2.bf16.msra.mxu1 %v1243_v43  ;;  %1126 = vmatprep.subr.bf16.mxu0 %v1265_v19 }
  0x6d   : > { %722 = vmatprep.subr.bf16.mxu1 %v1244_v44 }
  0x6f   : > { %1127 = vmatpush3.bf16.msra.mxu0 %v1266_v20 }
  0x70   : > { %723 = vmatpush2.bf16.msra.mxu1 %v1246_v45  ;;  %1128 = vmatprep.subr.bf16.mxu0 %v1267_v21 }
  0x71   : > { %724 = vmatprep.subr.bf16.mxu1 %v1247_v46 }
  0x73   : > { %1129 = vmatpush3.bf16.msra.mxu0 %v1268_v22 }
  0x74   : > { %725 = vmatpush2.bf16.msra.mxu1 %v1249_v47 }
  0x75   : > { %726 = vmatprep.subr.bf16.mxu1 %v1250_v48 }
  0x78   : > { %727 = vmatpush2.bf16.msra.mxu1 %v1252_v49 }
 0x116   : > { %v477_v1 = vpop.f32.mrf.mxu0 }
 0x117   : > { %v478_v8 = vadd.f32 %v477_v1, %v350_v3 }
 0x118   : > { %v479_v4 = vpop.f32.mrf.mxu0 }
 0x119   : > { %v480_v6 = vadd.f32 %v479_v4, %v354_v2  ;;  %v486_v14 = vmax.f32 %v478_v8, 0.0 }
 0x11a   : > { %v481_v5 = vpop.f32.mrf.mxu0 }
 0x11b   : > { %v482_v7 = vadd.f32 %v481_v5, %v350_v3  ;;  %v487_v12 = vmax.f32 %v480_v6, 0.0 }
 0x11c   : > { %v483_v9 = vpop.f32.mrf.mxu0 }
 0x11d   : > { %v484_v10 = vadd.f32 %v483_v9, %v354_v2  ;;  %v488_v11 = vmax.f32 %v482_v7, 0.0 }
 0x11f   : > { %v489_v13 = vmax.f32 %v484_v10, 0.0  ;;  %v490_v16 = vpack.c.bf16 %v488_v11, %v486_v14 }
 0x121   : > { %v491_v15 = vpack.c.bf16 %v489_v13, %v487_v12 }
 0x123   : > { %728 = vmatprep.mubr.bf16.mxu1 %v491_v15 }
 0x124   : > { %729 = vmatmul.mubr.bf16.vlgmr.msra.gmra.mxu1 %v490_v16 }
 0x1e4   : > { %v730_v24 = vpop.f32.mrf.mxu1 }
 0x1e5   : > { %v731_v31 = vadd.f32 %v730_v24, %v529_v26 }
 0x1e6   : > { %v732_v27 = vpop.f32.mrf.mxu1 }
 0x1e7   : > { %v733_v29 = vadd.f32 %v732_v27, %v533_v25  ;;  %v739_v37 = vmax.f32 %v731_v31, 0.0 }
 0x1e8   : > { %v734_v28 = vpop.f32.mrf.mxu1 }
 0x1e9   : > { %v735_v30 = vadd.f32 %v734_v28, %v529_v26  ;;  %v740_v35 = vmax.f32 %v733_v29, 0.0 }
 0x1ea   : > { %v736_v32 = vpop.f32.mrf.mxu1 }
 0x1eb   : > { %v737_v33 = vadd.f32 %v736_v32, %v533_v25  ;;  %v741_v34 = vmax.f32 %v735_v30, 0.0 }
 0x1ed   : > { %v742_v36 = vmax.f32 %v737_v33, 0.0  ;;  %v743_v39 = vpack.c.bf16 %v741_v34, %v739_v37 }
 0x1ef   : > { %v744_v38 = vpack.c.bf16 %v742_v36, %v740_v35 }
 0x1f1   : > { %912 = vmatprep.mubr.bf16.mxu0 %v744_v38 }
 0x1f2   : > { %913 = vmatmul.mubr.bf16.vlgmr.msra.gmra.mxu0 %v743_v39 }
 0x2b2   : > { %v1130_v40 = vpop.f32.mrf.mxu0 }
 0x2b4   : > { %v1131_v42 = vpop.f32.mrf.mxu0 }
 0x2b5   : > { %v1132_v43 = vadd.f32 %v1131_v42, %v1130_v40 }
 0x2b6   : > { %v1133_v44 = vpop.f32.mrf.mxu0 }
 0x2b7   : > { %v915_v45 = vadd.f32 %v1132_v43, %v1086_v41 }
 0x2b8   : > { %v1134_v46 = vpop.f32.mrf.mxu0 }
 0x2b9   : > { %v1135_v47 = vadd.f32 %v1134_v46, %v1133_v44  ;;  %1269 = vtanh.f32 %v915_v45 }
 0x2bb   : > { %v918_v48 = vadd.f32 %v1135_v47, %v1086_v41 }
 0x2bd   : > { %1271 = vtanh.f32 %v918_v48 }
 0x2c6   : > { %v1270_v49 = vpop.eup %1269 }
 0x2c7   : > { %v923_v51 = vmul.f32 2.0, %v1270_v49 }
 0x2ca   : > { %v1272_v50 = vpop.eup %1271 }
 0x2cb   : > { %v924_v52 = vmul.f32 2.0, %v1272_v50 }
 0x2cd   : > { %v1112_v53 = vpack.c.bf16 %v924_v52, %v923_v51 }
 0x2cf   : > { %1113 = vst [vmem:[%s324_s16] sm:$0xff] %v1112_v53  }
 0x2d0 PF: > { %s19_s24 = sadd.s32 1, %s1365_s24  }
 0x2d1   : > { %p16_p2 = scmp.ge.s32.totalorder %s19_s24, 4  }
 0x2d3   :  { %18 = sbr.rel (!%p16_p2) target bundleno = 2 (0x2), region = 91 }
 0x2d8   :  { %957 = vsyncpa [#allocation3], 1 }
 0x2d9   :  { %959 = vsyncpa [#allocation3 + $0x1], 1 }
 0x2da   :  { %960 = vsyncpa [#allocation5], 1 }

</bundles_post_ra>
